<compile_context>
chip_gen: v5e
topology: v5e:2x2
jax: 0.10.0
libtpu: 0.0.40
codegen_flags: <defaults>
</compile_context>

<pallas_src>
import jax
import jax.numpy as jnp
from jax.experimental import pallas as pl
from jax.experimental.pallas import tpu as pltpu


# ---------------------------------------------------------------------------
# Generation-specific budgets
# ---------------------------------------------------------------------------
def _query_vmem_bytes():
    try:
        return int(pltpu.get_tpu_info().vmem_capacity_bytes)
    except Exception:
        return 64 * 1024 * 1024  # conservative default (v7x-class)


_VMEM_PHYS = _query_vmem_bytes()
_IS_V7X_CLASS = _VMEM_PHYS < 100 * 1024 * 1024  # 64 MiB/TC, 2 TensorCores

if _IS_V7X_CLASS:
    _PIPELINE_VMEM_BUDGET = 20 * 1024 * 1024
    _RESIDENT_WEIGHT_BYTES = 8 * 1024 * 1024
    _VMEM_LIMIT_CAP = 52 * 1024 * 1024
else:  # v5e / v6e: 128 MiB VMEM, single TensorCore
    _PIPELINE_VMEM_BUDGET = 56 * 1024 * 1024
    _RESIDENT_WEIGHT_BYTES = 28 * 1024 * 1024
    _VMEM_LIMIT_CAP = 100 * 1024 * 1024

_FORCE_MULTI_M_STEPS = _IS_V7X_CLASS  # keep both v7x TCs busy; pointless on 1-TC chips
_MAX_TM = 1024                        # roofline knee ~512-1024 rows


def _round_up(x, m):
    return ((x + m - 1) // m) * m


# ---------------------------------------------------------------------------
# One-time eager probe: does this build accept pipeline_mode=pl.Buffered(1)?
# Called from __init__ only (never inside a jit trace).
# ---------------------------------------------------------------------------
_SINGLE_BUFFER_SUPPORTED = None


def _probe_single_buffer_support():
    global _SINGLE_BUFFER_SUPPORTED
    if _SINGLE_BUFFER_SUPPORTED is not None:
        return _SINGLE_BUFFER_SUPPORTED
    try:
        if not hasattr(pl, "Buffered"):
            raise AttributeError("pl.Buffered unavailable")

        def _k(x_ref, o_ref):
            o_ref[...] = x_ref[...] + 1.0

        fn = pl.pallas_call(
            _k,
            out_shape=jax.ShapeDtypeStruct((8, 128), jnp.float32),
            grid_spec=pltpu.PrefetchScalarGridSpec(
                num_scalar_prefetch=0,
                grid=(2,),
                in_specs=[pl.BlockSpec((8, 128), lambda i: (0, 0),
                                       pipeline_mode=pl.Buffered(1))],
                out_specs=pl.BlockSpec((8, 128), lambda i: (0, 0)),
            ),
        )
        jax.block_until_ready(fn(jnp.zeros((8, 128), jnp.float32)))
        _SINGLE_BUFFER_SUPPORTED = True
    except Exception:
        _SINGLE_BUFFER_SUPPORTED = False
    return _SINGLE_BUFFER_SUPPORTED


# ---------------------------------------------------------------------------
# Kernel: (tm, K) row-tile of patches  x  resident (K, tn) weight  + f32 bias
# ---------------------------------------------------------------------------
def _linear_bias_kernel(x_ref, w_ref, b_ref, o_ref):
    # x_ref: (tm, K) compute dtype; w_ref: (K, tn) compute dtype
    # b_ref: (1, tn) f32;           o_ref: (tm, tn) out dtype (bf16 by default)
    acc = jnp.dot(x_ref[...], w_ref[...], preferred_element_type=jnp.float32)
    o_ref[...] = (acc + b_ref[...]).astype(o_ref.dtype)


def _choose_tm(M, K, tn, x_itemsize, out_itemsize, resident_bytes):
    """Largest MXU/sublane-friendly row tile fitting the pipeline VMEM budget."""
    avail = max(_PIPELINE_VMEM_BUDGET - resident_bytes, 2 * 1024 * 1024)
    per_row = 2 * K * x_itemsize + 2 * tn * out_itemsize  # double-buffered x + out tiles
    tm = int(min(_MAX_TM, max(16, avail // per_row)))
    # Round to MXU/sublane-friendly sizes: multiples of 256, then 128, min 16.
    if tm >= 256:
        tm -= tm % 256
    elif tm >= 128:
        tm = 128
    else:
        tm = max(16, tm - (tm % 16))
    if _FORCE_MULTI_M_STEPS and tm >= M and M > 16:
        # v7x only: keep >= 2 grid steps along M so both TensorCores get work.
        tm = min(tm, max(16, _round_up(-(-M // 2), 16)))
    if tm >= M:
        tm = M  # tiny input: single full-extent block (allowed by Pallas)
    return int(tm)


def _make_linear_call(M, K, Npad, tm, tn, x_dtype, w_dtype, out_dtype,
                      single_buffer, n_outer, n_buf_inv):
    nm = pl.cdiv(M, tm)
    nn = pl.cdiv(Npad, tn)
    inv_kwargs = {"pipeline_mode": pl.Buffered(1)} if single_buffer else {}

    if n_outer:              # weight tiles fetched once; x rows re-streamed
        grid = (nn, nm)
        x_map = lambda j, i: (i, 0)
        w_map = lambda j, i: (0, j)
        o_map = lambda j, i: (i, j)
    else:                    # x fetched once; weight re-streamed (or resident, nn==1)
        grid = (nm, nn)
        x_map = lambda i, j: (i, 0)
        w_map = lambda i, j: (0, j)
        o_map = lambda i, j: (i, j)

    in_specs = [
        pl.BlockSpec((tm, K), x_map),                  # patch rows
        pl.BlockSpec((K, tn), w_map, **inv_kwargs),    # weight (resident when nn==1)
        pl.BlockSpec((1, tn), w_map, **inv_kwargs),    # bias row (f32)
    ]
    out_specs = pl.BlockSpec((tm, tn), o_map)

    x_sz = jnp.dtype(x_dtype).itemsize
    w_sz = jnp.dtype(w_dtype).itemsize
    o_sz = jnp.dtype(out_dtype).itemsize
    need = (2 * tm * K * x_sz
            + n_buf_inv * (K * tn * w_sz + tn * 4)
            + 2 * tm * tn * o_sz)
    vmem_limit = int(min(_VMEM_LIMIT_CAP, max(16 * 1024 * 1024, need + (4 << 20))))

    cost = pl.CostEstimate(
        flops=2 * M * K * Npad,
        transcendentals=0,
        bytes_accessed=(M * K * x_sz + K * Npad * w_sz + Npad * 4 + M * Npad * o_sz),
    )

    return pl.pallas_call(
        _linear_bias_kernel,
        out_shape=jax.ShapeDtypeStruct((M, Npad), out_dtype),
        grid_spec=pltpu.PrefetchScalarGridSpec(
            num_scalar_prefetch=0,
            grid=grid,
            in_specs=in_specs,
            out_specs=out_specs,
        ),
        compiler_params=pltpu.CompilerParams(
            dimension_semantics=("parallel", "parallel"),
            vmem_limit_bytes=vmem_limit,
        ),
        cost_estimate=cost,
    )


def _linear_pallas(x2d, w, b, out_dtype, single_buffer_ok):
    """y = x2d @ w + b (f32 accumulate, cast-on-store). x2d: (M, K), w: (K, Npad),
    b: (1, Npad) f32.  Non-divisible M handled via pl.cdiv + Pallas edge masking
    (rows are independent; garbage pad rows are computed but never written back)."""
    M, K = x2d.shape
    Kw, Npad = w.shape
    assert K == Kw and Npad % 128 == 0

    w_bytes = K * Npad * w.dtype.itemsize
    if w_bytes <= _RESIDENT_WEIGHT_BYTES:
        tn = Npad
    else:
        tn = min(512, Npad)
    nn = pl.cdiv(Npad, tn)

    single_buffer = bool(single_buffer_ok) and nn == 1
    n_buf_inv = 1 if single_buffer else 2
    resident = n_buf_inv * (K * tn * w.dtype.itemsize + tn * 4)

    out_itemsize = jnp.dtype(out_dtype).itemsize
    tm = _choose_tm(M, K, tn, x2d.dtype.itemsize, out_itemsize, resident)
    nm = pl.cdiv(M, tm)

    # If the weight had to be N-tiled, pick the grid order that minimizes
    # redundant HBM traffic: re-stream whichever operand is smaller.
    x_bytes = M * K * x2d.dtype.itemsize
    n_outer = (nn > 1) and ((nm - 1) * w_bytes >= (nn - 1) * x_bytes)

    call = _make_linear_call(M, K, Npad, tm, tn, x2d.dtype, w.dtype, out_dtype,
                             single_buffer, n_outer, n_buf_inv)
    return call(x2d, w, b)


# ---------------------------------------------------------------------------
# Module
# ---------------------------------------------------------------------------
class ImgPatchEmbeddingPallas:
    """JAX/Pallas equivalent of the PyTorch Img_patch_embedding module."""

    def __init__(self, image_size, patch_size, dim, channels=3, key=None,
                 compute_dtype=jnp.bfloat16, out_dtype=None):
        assert image_size % patch_size == 0, (
            "image dimensions must be divisible by the patch size")
        self.patch_size = patch_size
        self.dim = dim
        self.channels = channels
        self.compute_dtype = compute_dtype
        self.out_dtype = compute_dtype if out_dtype is None else out_dtype
        num_patches = (image_size // patch_size) ** 2
        patch_dim = channels * patch_size ** 2
        self.patch_dim = patch_dim
        # Lane-dense output: pad the embedding dim to a multiple of 128 so the
        # kernel's stores are full vst's; pad columns are sliced off afterwards.
        self.n_pad = _round_up(dim, 128)

        # One-time eager feature probe (never under jit) for Buffered(1).
        self._single_buffer_ok = _probe_single_buffer_support()

        if key is None:
            key = jax.random.PRNGKey(0)
        k_pos, k_w, k_b = jax.random.split(key, 3)

        # pos_embedding: (1, num_patches + 1, dim).  Intentionally UNUSED in
        # __call__ — the PyTorch reference forward() never applies it either.
        self.pos_embedding = jax.random.normal(
            k_pos, (1, num_patches + 1, dim), dtype=jnp.float32)

        # nn.Linear(patch_dim, dim) init.  Canonical weight (rows in the
        # original (p1, p2, c) order) kept in f32 for reference; the kernel
        # weight has its rows permuted to (c, p1, p2) to match the contiguous
        # patch rearrange, is padded to n_pad columns, and stored pre-transposed
        # (K, Npad) in the compute dtype.  Bias stays f32 (added post-accumulate).
        bound = 1.0 / (patch_dim ** 0.5)
        w_f32 = jax.random.uniform(
            k_w, (patch_dim, dim), minval=-bound, maxval=bound, dtype=jnp.float32)
        b_f32 = jax.random.uniform(
            k_b, (1, dim), minval=-bound, maxval=bound, dtype=jnp.float32)

        p, c = patch_size, channels
        w_perm = w_f32.reshape(p, p, c, dim).transpose(2, 0, 1, 3).reshape(patch_dim, dim)
        self.weight = (jnp.zeros((patch_dim, self.n_pad), compute_dtype)
                       .at[:, :dim].set(w_perm.astype(compute_dtype)))
        self.bias = jnp.zeros((1, self.n_pad), jnp.float32).at[:, :dim].set(b_f32)
        # f32 copies in the ORIGINAL (p1 p2 c) ordering, for reference checks.
        self._w_f32 = w_f32
        self._b_f32 = b_f32

    def __call__(self, img, mask=None):
        # img: (B, C, H, W) — NCHW, same as PyTorch.  `mask` is ignored,
        # matching the reference forward().
        B, C, H, W = img.shape
        p = self.patch_size
        h, w = H // p, W // p

        # rearrange 'b c (h p1) (w p2) -> b (h w) (c p1 p2)': the K ordering is
        # (c, p1, p2) so the minor transpose dim (p2) is stride-1 in the source
        # (contiguous runs), and the weight rows were permuted to match.  The
        # bf16 cast sits right after the transpose so XLA fuses it into the
        # same pass (reads f32, writes compute dtype).
        x = img.reshape(B, C, h, p, w, p)
        x = jnp.transpose(x, (0, 2, 4, 1, 3, 5))              # b h w c p1 p2
        x = x.astype(self.compute_dtype)
        x2d = x.reshape(B * h * w, C * p * p)                 # (M, K)

        y = _linear_pallas(x2d, self.weight, self.bias,
                           self.out_dtype, self._single_buffer_ok)  # (M, n_pad)
        if self.n_pad != self.dim:
            y = y[:, :self.dim]
        return y.reshape(B, h * w, self.dim)


if __name__ == "__main__":
    # Small shapes consistent with the module:
    #   batch=2, channels=4, image_size=16, patch_size=4, dim=32
    #   -> num_patches = 16, patch_dim = 64, M = 32, Npad = 128
    key = jax.random.PRNGKey(0)
    k_img, k_params = jax.random.split(key)

    B, C, IMG, P, DIM = 2, 4, 16, 4, 32
    img = jax.random.normal(k_img, (B, C, IMG, IMG), dtype=jnp.float32)

    module = ImgPatchEmbeddingPallas(IMG, P, DIM, channels=C, key=k_params)
    out = jax.block_until_ready(module(img))
    assert out.shape == (B, (IMG // P) ** 2, DIM)
    out_f32 = out.astype(jnp.float32)

    # Reference patches in the ORIGINAL (p1 p2 c) ordering, paired with the
    # original-order weight; the kernel's (c p1 p2) permutation is math-identical
    # up to f32 summation order.
    h = w = IMG // P
    patches = jnp.transpose(img.reshape(B, C, h, P, w, P), (0, 2, 4, 3, 5, 1))
    patches = patches.reshape(B, h * w, P * P * C)

    # Reference 1: same math (bf16 operands, f32 accumulate) in plain JAX.
    ref_bf16 = (jnp.dot(patches.astype(jnp.bfloat16),
                        module._w_f32.astype(jnp.bfloat16),
                        preferred_element_type=jnp.float32)
                + module._b_f32)
    err1 = float(jnp.max(jnp.abs(out_f32 - ref_bf16)))
    assert jnp.allclose(out_f32, ref_bf16, atol=3e-2, rtol=3e-2), err1

    # Reference 2: full-f32 math, loose tolerance (bf16 operand + output rounding).
    ref_f32 = patches @ module._w_f32 + module._b_f32
    err2 = float(jnp.max(jnp.abs(out_f32 - ref_f32)))
    assert jnp.allclose(out_f32, ref_f32, atol=8e-2, rtol=8e-2), err2

    print("KERNEL_OK")
</pallas_src>

<mosaic_0001>
module attributes {stable_mosaic.version = 11 : i64} {
  func.func @_k(%arg0: i32, %arg1: memref<8x128xf32, #tpu.memory_space<vmem>>, %arg2: memref<8x128xf32, #tpu.memory_space<vmem>>) attributes {dimension_semantics = [#tpu.dimension_semantics<arbitrary>], iteration_bounds = array<i64: 2>, scalar_prefetch = 0 : i64, scratch_operands = 0 : i64, tpu.core_type = #tpu.core_type<tc>, window_params = [{pipeline_mode = #tpu.pipeline_mode<synchronous>, transform_indices = @transform_0, window_bounds = array<i64: 8, 128>}, {pipeline_mode = #tpu.pipeline_mode<synchronous>, transform_indices = @transform_1, window_bounds = array<i64: 8, 128>}]} {
    %c0 = arith.constant 0 : index
    %c0_0 = arith.constant 0 : index
    %0 = vector.load %arg1[%c0, %c0_0] : memref<8x128xf32, #tpu.memory_space<vmem>>, vector<8x128xf32>
    %cst = arith.constant 1.000000e+00 : f32
    %1 = vector.broadcast %cst : f32 to vector<8x128xf32>
    %2 = arith.addf %0, %1 : vector<8x128xf32>
    %c0_1 = arith.constant 0 : index
    %c0_2 = arith.constant 0 : index
    %3 = vector.load %arg2[%c0_1, %c0_2] : memref<8x128xf32, #tpu.memory_space<vmem>>, vector<8x128xf32>
    tpu.vector_store %arg2[%c0_1, %c0_2], %2 {strides = array<i32>} : memref<8x128xf32, #tpu.memory_space<vmem>>, vector<8x128xf32>,
    return
  }
  func.func @transform_0(%arg0: i32) -> (i32, i32) {
    %c0_i32 = arith.constant 0 : i32
    %c0_i32_0 = arith.constant 0 : i32
    %c0_i32_1 = arith.constant 0 : i32
    return %c0_i32, %c0_i32_0 : i32, i32
  }
  func.func @transform_1(%arg0: i32) -> (i32, i32) {
    %c0_i32 = arith.constant 0 : i32
    %c0_i32_0 = arith.constant 0 : i32
    %c0_i32_1 = arith.constant 0 : i32
    return %c0_i32, %c0_i32_0 : i32, i32
  }
}

module attributes {stable_mosaic.version = 11 : i64} {
  func.func @_linear_bias_kernel(%arg0: i32, %arg1: i32, %arg2: memref<16x64xbf16, #tpu.memory_space<vmem>>, %arg3: memref<64x128xbf16, #tpu.memory_space<vmem>>, %arg4: memref<1x128xf32, #tpu.memory_space<vmem>>, %arg5: memref<16x128xbf16, #tpu.memory_space<vmem>>) attributes {dimension_semantics = [#tpu.dimension_semantics<parallel>, #tpu.dimension_semantics<parallel>], iteration_bounds = array<i64: 2, 1>, scalar_prefetch = 0 : i64, scratch_operands = 0 : i64, tpu.core_type = #tpu.core_type<tc>, window_params = [{transform_indices = @transform_0, window_bounds = array<i64: 16, 64>}, {transform_indices = @transform_1, window_bounds = array<i64: 64, 128>}, {transform_indices = @transform_2, window_bounds = array<i64: 1, 128>}, {transform_indices = @transform_3, window_bounds = array<i64: 16, 128>}]} {
    %c0 = arith.constant 0 : index
    %c0_0 = arith.constant 0 : index
    %0 = vector.load %arg2[%c0, %c0_0] : memref<16x64xbf16, #tpu.memory_space<vmem>>, vector<16x64xbf16>
    %c0_1 = arith.constant 0 : index
    %c0_2 = arith.constant 0 : index
    %1 = vector.load %arg3[%c0_1, %c0_2] : memref<64x128xbf16, #tpu.memory_space<vmem>>, vector<64x128xbf16>
    %cst = arith.constant dense<0.000000e+00> : vector<16x128xf32>
    %2 = tpu.matmul %0, %1, %cst {dimension_numbers = #tpu.dot_dimension_numbers<[1], [0], [0], [1], [0, 0, 1, 1], [], []>} : vector<16x64xbf16>, vector<64x128xbf16>, vector<16x128xf32> -> vector<16x128xf32>
    %c0_3 = arith.constant 0 : index
    %c0_4 = arith.constant 0 : index
    %3 = vector.load %arg4[%c0_3, %c0_4] : memref<1x128xf32, #tpu.memory_space<vmem>>, vector<1x128xf32>
    %4 = vector.broadcast %3 : vector<1x128xf32> to vector<16x128xf32>
    %5 = arith.addf %2, %4 : vector<16x128xf32>
    %6 = arith.truncf %5 : vector<16x128xf32> to vector<16x128xbf16>
    %c0_5 = arith.constant 0 : index
    %c0_6 = arith.constant 0 : index
    %7 = vector.load %arg5[%c0_5, %c0_6] : memref<16x128xbf16, #tpu.memory_space<vmem>>, vector<16x128xbf16>
    tpu.vector_store %arg5[%c0_5, %c0_6], %6 {strides = array<i32>} : memref<16x128xbf16, #tpu.memory_space<vmem>>, vector<16x128xbf16>,
    return
  }
  func.func @transform_0(%arg0: i32, %arg1: i32) -> (i32, i32) {
    %c0_i32 = arith.constant 0 : i32
    %c0_i32_0 = arith.constant 0 : i32
    return %arg0, %c0_i32 : i32, i32
  }
  func.func @transform_1(%arg0: i32, %arg1: i32) -> (i32, i32) {
    %c0_i32 = arith.constant 0 : i32
    %c0_i32_0 = arith.constant 0 : i32
    return %c0_i32, %arg1 : i32, i32
  }
  func.func @transform_2(%arg0: i32, %arg1: i32) -> (i32, i32) {
    %c0_i32 = arith.constant 0 : i32
    %c0_i32_0 = arith.constant 0 : i32
    return %c0_i32, %arg1 : i32, i32
  }
  func.func @transform_3(%arg0: i32, %arg1: i32) -> (i32, i32) {
    %c0_i32 = arith.constant 0 : i32
    return %arg0, %arg1 : i32, i32
  }
}

</mosaic_0001>

<bundles_post_ra>
// kernel: tpu_custom_call.1
= control target key start
LH: loop header
LB: loop body
LE: loop exit
PB: predicated region body
PF: predicated region fallthrough
CT: control target
= control target key end

     0   :  { %6 = vsyncpa [#allocation3], 0  ;;  %s287_s0 = inlined_call_operand.hbm [shape: f32[8,128], index: 0, kind: input, shape index: {}]   ;;  %s288_s1 = inlined_call_operand.hbm [shape: f32[8,128], index: 1, kind: output, shape index: {}]  }
   0x1   :  { %7 = vsyncpa [#allocation4], 0  ;;  %s270_s6 = smov 0  }
   0x2 LB: > { %s149_s7 = sadd.s32 4294967295, %s256_s6   ;;  %p150_p0 = scmp.ge.s32.totalorder %s256_s6, 1  ;;  %s256_s6 = sphi %s270_s6, %s13_s6  }
   0x3   : > { %p60_p1 = scmp.lt.s32.totalorder %s256_s6, 3  ;;  %s72_s10 = sshll.u32 %s287_s0, 4  ;;  %s73_s10 = int_to_ptr.hbm [resolvable:$true] %s72_s10 }
   0x4   : > { %p170_p3 = scmp.eq.s32.totalorder %s149_s7, 0  ;;  %s258_s11 = smov [#allocation2]  }
   0x5   : > { %p61_p2 = pnand %p150_p0, %p60_p1  ;;  %s74_s12 = sshll.u32 %s258_s11, 4  ;;  %s75_s12 = int_to_ptr.vmem [resolvable:$true] %s74_s12 }
   0x7   : > { %p166_p4 = pneg %p61_p2  ;;  %87 = sbr.rel (%p61_p2) target bundleno = 20 (0x14), region = 24 }
   0x9   : > { %p167_p5 = pnand %p170_p3, %p166_p4 }
   0xb   : > { %169 = dma.hbm_to_vmem [thread:$0]  (!%p167_p5), %s73_s10, 128, %s75_s12, [#allocation3]  }
   0xc   : > { %247 = dma.done.wait (%p170_p3), [#allocation3], 128  }
   0xd   : > { %249 = vsyncadd (%p170_p3), [#allocation3], 4294967168  ;;  %s259_s13 = smov [#allocation5]   ;;  %s109_s17 = sshll.u32 %s288_s1, 4  ;;  %v98_v0 = vld [vmem:[#allocation2] sm:$0xff]  ;;  %s110_s17 = int_to_ptr.hbm [resolvable:$true] %s109_s17 }
   0xe   : > { %s107_s14 = sshll.u32 %s259_s13, 4  ;;  %p172_p6 = scmp.eq.s32.totalorder %s149_s7, 1  ;;  %v99_v1 = vadd.f32 1.0, %v98_v0  ;;  %s108_s14 = int_to_ptr.vmem [resolvable:$true] %s107_s14 }
  0x10   : > { %100 = vst [vmem:[#allocation5] sm:$0xff] %v99_v1 }
  0x11   : > { %163 = dma.vmem_to_hbm [thread:$0]  (%p172_p6), %s108_s14, 128, %s110_s17, [#allocation4]  }
  0x12   : > { %251 = dma.done.wait (%p172_p6), [#allocation4], 128  }
  0x13   : > { %253 = vsyncadd (%p172_p6), [#allocation4], 4294967168 }
  0x14 PF: > { %s13_s6 = sadd.s32 1, %s256_s6  }
  0x15   : > { %p10_p7 = scmp.ge.s32.totalorder %s13_s6, 4  }
  0x17   :  { %12 = sbr.rel (!%p10_p7) target bundleno = 2 (0x2), region = 53 }
  0x1c   :  { %123 = vsyncpa [#allocation3], 1 }
  0x1d   :  { %125 = vsyncpa [#allocation3 + $0x1], 1 }
  0x1e   :  { %126 = vsyncpa [#allocation4], 1 }
  0x1f   :  { %128 = vsyncpa [#allocation4 + $0x1], 1 }

// kernel: tpu_custom_call.1
= control target key start
LH: loop header
LB: loop body
LE: loop exit
PB: predicated region body
PF: predicated region fallthrough
CT: control target
= control target key end

     0   :  { %s895_s0 = inlined_call_operand.hbm [shape: bf16[32,64], index: 0, kind: input, shape index: {}]   ;;  %s896_s1 = inlined_call_operand.hbm [shape: bf16[64,128], index: 1, kind: input, shape index: {}]   ;;  %s897_s2 = inlined_call_operand.vmem [shape: f32[1,128], index: 2, kind: input, shape index: {}]   ;;  %s898_s3 = inlined_call_operand.hbm [shape: bf16[32,128], index: 3, kind: output, shape index: {}]  }
   0x1   :  { %900 = sst [smem:[#allocation11_spill]] %s896_s1 }
   0x2   :  { %8 = vsyncpa [#allocation3], 0 }
   0x3   :  { %10 = vsyncpa [#allocation3 + $0x1], 0 }
   0x4   :  { %11 = vsyncpa [#allocation6], 0 }
   0x5   :  { %12 = vsyncpa [#allocation4], 0 }
   0x6   :  { %14 = vsyncpa [#allocation4 + $0x1], 0  ;;  %s737_s12 = smov 0   ;;  %s739_s13 = smov 0  }
   0x7   :  { %s741_s14 = smov 0   ;;  %s743_s15 = smov 0  }
   0x8   :  { %s745_s16 = smov 0   ;;  %s747_s17 = smov 0  }
   0x9 LB: > { %s435_s18 = sadd.s32 4294967295, %s710_s17   ;;  %s436_s19 = sadd.s32 4294967294, %s710_s17   ;;  %s710_s17 = sphi %s747_s17, %s20_s17   ;;  %s706_s16 = sphi %s745_s16, %s914_s16   ;;  %s702_s15 = sphi %s743_s15, %s913_s15   ;;  %s698_s14 = sphi %s741_s14, %s912_s14   ;;  %s694_s13 = sphi %s739_s13, %s911_s13   ;;  %s690_s12 = sphi %s737_s12, %s910_s12  }
   0xa   : > { %p52_p0 = scmp.ne.s32.totalorder %s694_s13, %s690_s12  ;;  %p771_p1 = scmp.eq.s32.totalorder %s435_s18, 0 }
   0xb   : > { %p775_p2 = scmp.eq.s32.totalorder %s435_s18, 1  ;;  %p136_p3 = scmp.eq.s32.totalorder %s436_s19, 1 }
   0xc   : > { %p781_p4 = por %p771_p1, %p52_p0  ;;  %p437_p5 = scmp.ge.s32.totalorder %s710_s17, 1 }
   0xd   : > { %p786_p6 = por %p136_p3, %p52_p0  ;;  %p143_p7 = scmp.lt.s32.totalorder %s710_s17, 3 }
   0xe   : > { %s905_s1 = sld [smem:[#allocation11_spill]]  ;;  %s712_s28 = smov [#allocation5]  }
   0xf   : > { %p794_p8 = pnand %p437_p5, %p143_p7  ;;  %s158_s29 = sshll.u32 %s712_s28, 4  ;;  %s159_s29 = int_to_ptr.vmem [resolvable:$true] %s158_s29 }
  0x10   : > { %p440_p11 = scmp.ge.s32.totalorder %s710_s17, 2  ;;  %s899_s30 = smov 64  }
  0x11   : > { %p494_p9 = pneg %p794_p8  ;;  %s714_s4 = smov 4  }
  0x12   : > { %s32_s5 = sadd.s32 1, %s706_s16  ;;  %s39_s6 = sadd.s32 1, %s698_s14 }
  0x13   : > { %p495_p10 = pnand %p494_p9, %p771_p1  ;;  %p34_p12 = scmp.ge.s32.totalorder %s32_s5, 2 }
  0x14   : > { %s156_s26 = sshll.u32 %s905_s1, 4  ;;  %p46_p13 = scmp.ne.s32.totalorder %s698_s14, %s694_s13  ;;  %s157_s26 = int_to_ptr.hbm [resolvable:$true] %s156_s26 }
  0x15   : > { %497 = dma.hbm_to_vmem [thread:$0]  (!%p495_p10), %s157_s26, 512, %s159_s29, [#allocation6], %s899_s30, %s899_s30, %s714_s4  }
  0x16   : > { %p47_p0 = scmp.eq.s32.totalorder %s710_s17, 0  ;;  %s916_s5 = smov (%p34_p12, %s32_s5), 0 }
  0x17   : > { %p819_p5 = por %p775_p2, %p46_p13  ;;  %s36_s9 = ssub.s32 %s706_s16, %s916_s5 }
  0x18   : > { %p813_p3 = por %p47_p0, %p46_p13  ;;  %p507_p7 = scmp.lt.s32.totalorder %s710_s17, 2 }
  0x19   : > { %p37_p9 = scmp.eq.s32.totalorder %s36_s9, 0  ;;  %s178_s10 = sand.u32 1, %s698_s14  }
  0x1a   : > { %s441_s11 = sshll.u32 %s178_s10, 3  ;;  %s474_s19 = sshll.u32 %s706_s16, 3 }
  0x1b   : > { %s828_s18 = scalar_select %p37_p9, %s698_s14, %s39_s6  }
  0x1c   : > { %s187_s26 = scalar_lea.hbm %s895_s0, %s474_s19  ;;  %s182_s28 = scalar_lea.vmem [#allocation2], %s441_s11 }
  0x1d   : > { %s190_s29 = sshll.u32 %s182_s28, 4  ;;  %s188_s21 = sshll.u32 %s187_s26, 4  ;;  %s191_s29 = int_to_ptr.vmem [resolvable:$true] %s190_s29  ;;  %s189_s21 = int_to_ptr.hbm [resolvable:$true] %s188_s21 }
  0x1e   : > { %p499_p2 = pnand %p507_p7, %p813_p3  ;;  %s179_s30 = scalar_lea.sflag [#allocation3], %s178_s10 }
  0x1f   : > { %s909_s1 = smov 64   ;;  %202 = sbr.rel (%p794_p8) target bundleno = 197 (0xc5), region = 32 }
  0x20   : > { %501 = dma.hbm_to_vmem [thread:$0]  (!%p499_p2), %s189_s21, 128, %s191_s29, %s179_s30, %s909_s1, %s909_s1, %s714_s4  }
  0x21   : > { %s842_s6 = sand.u32 (!%p794_p8), 1, %s694_s13  }
  0x22   : > { %s445_s9 = sshll.u32 (!%p794_p8), %s842_s6, 3  ;;  %s205_s11 = scalar_lea.sflag (!%p794_p8), [#allocation3], %s842_s6 }
  0x23   : > { %s208_s19 = scalar_lea.vmem (!%p794_p8), [#allocation2], %s445_s9 }
  0x24   : > { %677 = dma.done.wait (%p781_p4), %s205_s11, 128  }
  0x25   : > { %679 = vsyncadd (%p781_p4), %s205_s11, 4294967168 }
  0x26   : > { %681 = dma.done.wait (%p771_p1), [#allocation6], 512  }
  0x27   : > { %683 = vsyncadd (%p771_p1), [#allocation6], 4294966784  ;;  %v479_v0 = vld [vmem:[#allocation5 + $0x18] sm:$0xff]  ;;  %v478_v1 = vld [vmem:[#allocation5 + $0x10] sm:$0xff]  ;;  %vm289_vm0 = vcmask 523264   ;;  %s480_s1 = sshll.u32 %s702_s15, 3 }
  0x28   : > { %297 = vmatpush.bf16.msra.mxu0 %v479_v0  ;;  %v477_v2 = vld [vmem:[#allocation5 + $0x8] sm:$0xff]  ;;  %v476_v3 = vld [vmem:[#allocation5] sm:$0xff]  ;;  %v475_v4 = vld [vmem:[%s208_s19] sm:$0xff]  ;;  %s324_s20 = scalar_lea.hbm %s898_s3, %s480_s1  ;;  %s239_s7 = scalar_lea.vmem [#allocation7], %s445_s9 }
  0x29   : > { %v563_v6 = vld [vmem:[%s897_s2] ss:$0 sm:$0xff]  ;;  %s325_s10 = sshll.u32 %s239_s7, 4  ;;  %s327_s24 = sshll.u32 %s324_s20, 4  ;;  %s326_s10 = int_to_ptr.vmem [resolvable:$true] %s325_s10  ;;  %s328_s24 = int_to_ptr.hbm [resolvable:$true] %s327_s24 }
  0x2a   : > { %s312_s15 = scalar_lea.sflag [#allocation4], %s842_s6  ;;  %s638_s25 = sshra.s32 %s328_s24, 4  ;;  %s639_s25 = int_to_ptr.hbm [resolvable:$true] %s638_s25 }
  0x2b   : > { %s640_s26 = scalar_lea.hbm %s639_s25, 8  ;;  %s644_s21 = scalar_lea.hbm %s898_s3, 16 }
  0x2c   : > { %298 = vmatpush.bf16.msra.mxu0 %v478_v1  ;;  %p641_p1 = scmp.ne.s32.totalorder %s639_s25, %s640_s26  ;;  %p645_p10 = scmp.lt.s32.totalorder %s639_s25, %s898_s3 }
  0x2d   : > { %p646_p12 = scmp.lt.s32.totalorder %s644_s21, %s640_s26 }
  0x2e   : > { %p642_p4 = pnand %p641_p1, %p819_p5 }
  0x2f   : > { %p647_p13 = por %p646_p12, %p645_p10 }
  0x30   : > { %299 = vmatpush.bf16.msra.mxu0 %v477_v2  ;;  %p643_p8 = pneg %p642_p4 }
  0x32   : > { %p648_p0 = pnand %p647_p13, %p643_p8 }
  0x34   : > { %300 = vmatpush.bf16.msra.mxu0 %v476_v3 }
  0x37   : > { %468 = vmatmul.msk.bf16.vlgmr.msra.gmra.mxu0 %vm289_vm0, %v475_v4 }
  0xb4   : > { %v302_v5 = vpop.f32.mrf.mxu0 }
  0xb5   : > { %v303_v8 = vadd.f32 %v563_v6, %v302_v5 }
  0xbc   : > { %v304_v7 = vpop.f32.mrf.mxu0 }
  0xbd   : > { %v305_v9 = vadd.f32 %v563_v6, %v304_v7 }
  0xbf   : > { %v484_v10 = vpack.c.bf16 %v305_v9, %v303_v8 }
  0xc1   : > { %485 = vst [vmem:[%s239_s7] sm:$0xff] %v484_v10  }
  0xc2   : > { %651 = shalt.err (!%p648_p0)
}
  0xc3   : > { %s715_s6 = smov 64   ;;  %s716_s19 = smov 4  }
  0xc4   : > { %492 = dma.vmem_to_hbm [thread:$0]  (%p819_p5), %s326_s10, 128, %s328_s24, %s312_s15, %s715_s6, %s715_s6, %s716_s19  }
  0xc5 PF: > { %s342_s1 = sand.u32 1, %s690_s12   ;;  %p503_p3 = pnand %p440_p11, %p786_p6 }
  0xc6   : > { %s343_s22 = scalar_lea.sflag [#allocation4], %s342_s1 }
  0xc7   : > { %p504_p7 = pneg %p503_p3 }
  0xc9   : > { %685 = dma.done.wait (%p504_p7), %s343_s22, 128  }
  0xca   : > { %687 = vsyncadd (%p504_p7), %s343_s22, 4294967168  ;;  %s20_s17 = sadd.s32 1, %s710_s17   ;;  %s910_s12 = smov %s694_s13 }
  0xcb   : > { %p17_p9 = scmp.ge.s32.totalorder %s20_s17, 4   ;;  %s911_s13 = smov %s698_s14 }
  0xcc   : > { %s912_s14 = smov %s828_s18  ;;  %s913_s15 = smov %s706_s16 }
  0xcd   : > { %s914_s16 = smov %s916_s5  ;;  %19 = sbr.rel (!%p17_p9) target bundleno = 9 (0x9), region = 85 }
  0xd2   :  { %349 = vsyncpa [#allocation3], 1 }
  0xd3   :  { %351 = vsyncpa [#allocation3 + $0x1], 1 }
  0xd4   :  { %352 = vsyncpa [#allocation6], 1 }
  0xd5   :  { %353 = vsyncpa [#allocation4], 1 }
  0xd6   :  { %355 = vsyncpa [#allocation4 + $0x1], 1 }

</bundles_post_ra>
